<compile_context>
chip_gen: v7x
topology: tpu7x:2x2x1
jax: 0.10.0
libtpu: 0.0.40
codegen_flags: <defaults>
</compile_context>

<pallas_src>
import functools

import jax
import jax.numpy as jnp
from jax.experimental import pallas as pl
from jax.experimental.pallas import tpu as pltpu


def _make_fused_kernel(H, W, c_in=3, c_mid=3, c_out=6, mxu_bf16=False):
    """Fused conv0->conv1->conv2->addmm->cat kernel, closed over static sizes."""
    # Offsets into the single packed 1-D SMEM parameter vector.
    W0 = 0
    B0 = W0 + c_mid * c_in          # 9
    W1 = B0 + c_mid                 # 12
    B1 = W1 + c_out * c_mid         # 30
    W2 = B1 + c_out                 # 36
    B2 = W2 + c_out * c_out         # 72
    n_params = B2 + c_out           # 78

    def kernel(p_ref, x_ref, out_ref, v1x8_scr):
        # p_ref:     (78,)      SMEM  packed [w0, b0, w1, b1, w2, b2]
        # x_ref:     (3H, W)    VMEM  matrix view of the NCHW input (N=1)
        # out_ref:   (12H, W)   VMEM  rows [0,6H) = v2, rows [6H,12H) = v4
        # v1x8_scr:  (3H, W)    VMEM  scratch holding v1 * 8 (dot RHS)

        def conv1x1(w_off, b_off, inp_blocks, cout, cin):
            # 1x1 conv == per-output-channel scalar-weighted sum of the input
            # channel blocks.  Unrolled VPU broadcast-FMAs with scalars read
            # from SMEM; the MXU stays free for the addmm contraction.
            outs = []
            for co in range(cout):
                acc = p_ref[b_off + co] + p_ref[w_off + co * cin] * inp_blocks[0]
                for ci in range(1, cin):
                    acc = acc + p_ref[w_off + co * cin + ci] * inp_blocks[ci]
                outs.append(acc)
            return outs

        # Per-channel (H, W) blocks of the input in the matrix view.
        x_blocks = [x_ref[c * H:(c + 1) * H, :] for c in range(c_in)]

        v1_blocks = conv1x1(W0, B0, x_blocks, c_mid, c_in)    # 3 x (H, W)
        v2_blocks = conv1x1(W1, B1, v1_blocks, c_out, c_mid)  # 6 x (H, W)

        # Dot RHS: (v1 * 8) assembled block-by-block into VMEM scratch
        # (x8 is a power of two -> exact in f32).
        for c in range(c_mid):
            v1x8_scr[c * H:(c + 1) * H, :] = v1_blocks[c] * 8.0

        # v2 is the first half of the output: store it before the matmul so
        # the stores overlap MXU work, then re-read it as the dot LHS.
        for co in range(c_out):
            out_ref[co * H:(co + 1) * H, :] = v2_blocks[co]

        v3_blocks = conv1x1(W2, B2, v2_blocks, c_out, c_out)  # 6 x (H, W)

        lhs = out_ref[0:c_out * H, :]   # v2 matrix view   (6H, W)
        rhs = v1x8_scr[...]             # (v1*8) view      (3H, W) == (W, W)
        if mxu_bf16:
            # Large-H fast path on v6e/v7x: bf16 MXU operands, f32 accumulate.
            lhs = lhs.astype(jnp.bfloat16)
            rhs = rhs.astype(jnp.bfloat16)
        prod = jnp.dot(lhs, rhs, preferred_element_type=jnp.float32)

        # v4 = v3 + v2 @ (v1*8): fold each v3 block directly into the matching
        # row-slice of the dot result.  v3/v4 never exist as whole matrices.
        for co in range(c_out):
            out_ref[(c_out + co) * H:(c_out + co + 1) * H, :] = (
                prod[co * H:(co + 1) * H, :] + v3_blocks[co])

    return kernel, n_params


@functools.partial(jax.jit, static_argnames=("mxu_bf16",))
def model_forward(x, w0, b0, w1, b1, w2, b2, mxu_bf16=False):
    N, C, H, W = x.shape
    assert N == 1 and C == 3, "module expects a single 3-channel image"
    assert W == 3 * H, "reinterpreted addmm needs W == 3*H"
    assert H % 8 == 0, "H must be a multiple of 8 for f32 (8,128) tile alignment"
    f32 = jnp.float32

    # Accept PyTorch Conv2d-style (out, in, 1, 1) weights or squeezed (out, in).
    w0 = w0.reshape(w0.shape[0], -1).astype(f32)
    w1 = w1.reshape(w1.shape[0], -1).astype(f32)
    w2 = w2.reshape(w2.shape[0], -1).astype(f32)
    b0, b1, b2 = (b.astype(f32) for b in (b0, b1, b2))

    # One flat SMEM parameter vector (one tiny DMA, ~512 B padded).
    params = jnp.concatenate(
        [w0.ravel(), b0, w1.ravel(), b1, w2.ravel(), b2])

    # (1, 3, H, W) -> (3H, W) matrix view (contiguous reshape, done once).
    x_m = x.reshape(3 * H, W).astype(f32)

    kernel, n_params = _make_fused_kernel(H, W, mxu_bf16=mxu_bf16)
    assert params.shape == (n_params,)

    out_m = pl.pallas_call(
        kernel,
        out_shape=jax.ShapeDtypeStruct((12 * H, W), f32),
        in_specs=[
            pl.BlockSpec(memory_space=pltpu.MemorySpace.SMEM),   # packed params
            pl.BlockSpec(memory_space=pltpu.MemorySpace.VMEM),   # x matrix view
        ],
        out_specs=pl.BlockSpec(memory_space=pltpu.MemorySpace.VMEM),
        scratch_shapes=[pltpu.VMEM((3 * H, W), f32)],            # v1 * 8
    )(params, x_m)

    # Rows [0, 6H) = v2 channels, rows [6H, 12H) = v4 channels.
    return out_m.reshape(1, 12, H, W)


def reference_forward(x, w0, b0, w1, b1, w2, b2):
    """Pure-JAX reference implementing the same (reinterpreted) semantics."""
    N, C, H, W = x.shape
    w0 = w0.reshape(w0.shape[0], -1)
    w1 = w1.reshape(w1.shape[0], -1)
    w2 = w2.reshape(w2.shape[0], -1)
    v1 = jnp.einsum('oc,nchw->nohw', w0, x) + b0[None, :, None, None]
    v2 = jnp.einsum('oc,nchw->nohw', w1, v1) + b1[None, :, None, None]
    v3 = jnp.einsum('oc,nchw->nohw', w2, v2) + b2[None, :, None, None]
    v1m = v1.reshape(3 * H, W)
    v2m = v2.reshape(6 * H, W)
    v3m = v3.reshape(6 * H, W)
    # TODO(synk): torch.addmm on 4-D tensors is undefined in PyTorch; this is
    # the documented (C*H, W)-matrix reinterpretation of addmm(v3, v2, v1*8).
    v4m = v3m + v2m @ (v1m * 8.0)
    v4 = v4m.reshape(1, 6, H, W)
    return jnp.concatenate([v2, v4], axis=1)


if __name__ == "__main__":
    key = jax.random.PRNGKey(0)
    kx, k0, kb0, k1, kb1, k2, kb2 = jax.random.split(key, 7)

    # Small shapes consistent with the module (1x1 convs, 3->3->6->6 channels).
    # W == 3*H so the reinterpreted addmm is well defined; H multiple of 8.
    H, W = 8, 24
    x1 = jax.random.normal(kx, (1, 3, H, W), dtype=jnp.float32)

    # PyTorch Conv2d-style (out, in, 1, 1) weights.
    w0 = jax.random.normal(k0, (3, 3, 1, 1), dtype=jnp.float32) * 0.1
    b0 = jax.random.normal(kb0, (3,), dtype=jnp.float32) * 0.1
    w1 = jax.random.normal(k1, (6, 3, 1, 1), dtype=jnp.float32) * 0.1
    b1 = jax.random.normal(kb1, (6,), dtype=jnp.float32) * 0.1
    w2 = jax.random.normal(k2, (6, 6, 1, 1), dtype=jnp.float32) * 0.1
    b2 = jax.random.normal(kb2, (6,), dtype=jnp.float32) * 0.1

    out = model_forward(x1, w0, b0, w1, b1, w2, b2)
    out = jax.block_until_ready(out)

    ref = reference_forward(x1, w0, b0, w1, b1, w2, b2)
    assert out.shape == (1, 12, H, W), out.shape
    assert jnp.allclose(out, ref, rtol=1e-4, atol=1e-4), "mismatch vs reference"

    print("KERNEL_OK")
</pallas_src>

<mosaic_0001>
module attributes {stable_mosaic.version = 11 : i64} {
  func.func @kernel(%arg0: memref<78xf32, #tpu.memory_space<smem>>, %arg1: memref<24x24xf32, #tpu.memory_space<vmem>>, %arg2: memref<96x24xf32, #tpu.memory_space<vmem>>, %arg3: memref<24x24xf32, #tpu.memory_space<vmem>>) attributes {dimension_semantics = [], scalar_prefetch = 0 : i64, scratch_operands = 1 : i64, tpu.core_type = #tpu.core_type<tc>} {
    %c0 = arith.constant 0 : index
    %c0_0 = arith.constant 0 : index
    %0 = vector.load %arg1[%c0, %c0_0] : memref<24x24xf32, #tpu.memory_space<vmem>>, vector<8x24xf32>
    %c8 = arith.constant 8 : index
    %c0_1 = arith.constant 0 : index
    %1 = vector.load %arg1[%c8, %c0_1] : memref<24x24xf32, #tpu.memory_space<vmem>>, vector<8x24xf32>
    %c16 = arith.constant 16 : index
    %c0_2 = arith.constant 0 : index
    %2 = vector.load %arg1[%c16, %c0_2] : memref<24x24xf32, #tpu.memory_space<vmem>>, vector<8x24xf32>
    %c9 = arith.constant 9 : index
    %3 = memref.load %arg0[%c9] : memref<78xf32, #tpu.memory_space<smem>>
    %c0_3 = arith.constant 0 : index
    %4 = memref.load %arg0[%c0_3] : memref<78xf32, #tpu.memory_space<smem>>
    %5 = vector.broadcast %4 : f32 to vector<8x24xf32>
    %6 = arith.mulf %5, %0 : vector<8x24xf32>
    %7 = vector.broadcast %3 : f32 to vector<8x24xf32>
    %8 = arith.addf %7, %6 : vector<8x24xf32>
    %c1 = arith.constant 1 : index
    %9 = memref.load %arg0[%c1] : memref<78xf32, #tpu.memory_space<smem>>
    %10 = vector.broadcast %9 : f32 to vector<8x24xf32>
    %11 = arith.mulf %10, %1 : vector<8x24xf32>
    %12 = arith.addf %8, %11 : vector<8x24xf32>
    %c2 = arith.constant 2 : index
    %13 = memref.load %arg0[%c2] : memref<78xf32, #tpu.memory_space<smem>>
    %14 = vector.broadcast %13 : f32 to vector<8x24xf32>
    %15 = arith.mulf %14, %2 : vector<8x24xf32>
    %16 = arith.addf %12, %15 : vector<8x24xf32>
    %c10 = arith.constant 10 : index
    %17 = memref.load %arg0[%c10] : memref<78xf32, #tpu.memory_space<smem>>
    %c3 = arith.constant 3 : index
    %18 = memref.load %arg0[%c3] : memref<78xf32, #tpu.memory_space<smem>>
    %19 = vector.broadcast %18 : f32 to vector<8x24xf32>
    %20 = arith.mulf %19, %0 : vector<8x24xf32>
    %21 = vector.broadcast %17 : f32 to vector<8x24xf32>
    %22 = arith.addf %21, %20 : vector<8x24xf32>
    %c4 = arith.constant 4 : index
    %23 = memref.load %arg0[%c4] : memref<78xf32, #tpu.memory_space<smem>>
    %24 = vector.broadcast %23 : f32 to vector<8x24xf32>
    %25 = arith.mulf %24, %1 : vector<8x24xf32>
    %26 = arith.addf %22, %25 : vector<8x24xf32>
    %c5 = arith.constant 5 : index
    %27 = memref.load %arg0[%c5] : memref<78xf32, #tpu.memory_space<smem>>
    %28 = vector.broadcast %27 : f32 to vector<8x24xf32>
    %29 = arith.mulf %28, %2 : vector<8x24xf32>
    %30 = arith.addf %26, %29 : vector<8x24xf32>
    %c11 = arith.constant 11 : index
    %31 = memref.load %arg0[%c11] : memref<78xf32, #tpu.memory_space<smem>>
    %c6 = arith.constant 6 : index
    %32 = memref.load %arg0[%c6] : memref<78xf32, #tpu.memory_space<smem>>
    %33 = vector.broadcast %32 : f32 to vector<8x24xf32>
    %34 = arith.mulf %33, %0 : vector<8x24xf32>
    %35 = vector.broadcast %31 : f32 to vector<8x24xf32>
    %36 = arith.addf %35, %34 : vector<8x24xf32>
    %c7 = arith.constant 7 : index
    %37 = memref.load %arg0[%c7] : memref<78xf32, #tpu.memory_space<smem>>
    %38 = vector.broadcast %37 : f32 to vector<8x24xf32>
    %39 = arith.mulf %38, %1 : vector<8x24xf32>
    %40 = arith.addf %36, %39 : vector<8x24xf32>
    %c8_4 = arith.constant 8 : index
    %41 = memref.load %arg0[%c8_4] : memref<78xf32, #tpu.memory_space<smem>>
    %42 = vector.broadcast %41 : f32 to vector<8x24xf32>
    %43 = arith.mulf %42, %2 : vector<8x24xf32>
    %44 = arith.addf %40, %43 : vector<8x24xf32>
    %c30 = arith.constant 30 : index
    %45 = memref.load %arg0[%c30] : memref<78xf32, #tpu.memory_space<smem>>
    %c12 = arith.constant 12 : index
    %46 = memref.load %arg0[%c12] : memref<78xf32, #tpu.memory_space<smem>>
    %47 = vector.broadcast %46 : f32 to vector<8x24xf32>
    %48 = arith.mulf %47, %16 : vector<8x24xf32>
    %49 = vector.broadcast %45 : f32 to vector<8x24xf32>
    %50 = arith.addf %49, %48 : vector<8x24xf32>
    %c13 = arith.constant 13 : index
    %51 = memref.load %arg0[%c13] : memref<78xf32, #tpu.memory_space<smem>>
    %52 = vector.broadcast %51 : f32 to vector<8x24xf32>
    %53 = arith.mulf %52, %30 : vector<8x24xf32>
    %54 = arith.addf %50, %53 : vector<8x24xf32>
    %c14 = arith.constant 14 : index
    %55 = memref.load %arg0[%c14] : memref<78xf32, #tpu.memory_space<smem>>
    %56 = vector.broadcast %55 : f32 to vector<8x24xf32>
    %57 = arith.mulf %56, %44 : vector<8x24xf32>
    %58 = arith.addf %54, %57 : vector<8x24xf32>
    %c31 = arith.constant 31 : index
    %59 = memref.load %arg0[%c31] : memref<78xf32, #tpu.memory_space<smem>>
    %c15 = arith.constant 15 : index
    %60 = memref.load %arg0[%c15] : memref<78xf32, #tpu.memory_space<smem>>
    %61 = vector.broadcast %60 : f32 to vector<8x24xf32>
    %62 = arith.mulf %61, %16 : vector<8x24xf32>
    %63 = vector.broadcast %59 : f32 to vector<8x24xf32>
    %64 = arith.addf %63, %62 : vector<8x24xf32>
    %c16_5 = arith.constant 16 : index
    %65 = memref.load %arg0[%c16_5] : memref<78xf32, #tpu.memory_space<smem>>
    %66 = vector.broadcast %65 : f32 to vector<8x24xf32>
    %67 = arith.mulf %66, %30 : vector<8x24xf32>
    %68 = arith.addf %64, %67 : vector<8x24xf32>
    %c17 = arith.constant 17 : index
    %69 = memref.load %arg0[%c17] : memref<78xf32, #tpu.memory_space<smem>>
    %70 = vector.broadcast %69 : f32 to vector<8x24xf32>
    %71 = arith.mulf %70, %44 : vector<8x24xf32>
    %72 = arith.addf %68, %71 : vector<8x24xf32>
    %c32 = arith.constant 32 : index
    %73 = memref.load %arg0[%c32] : memref<78xf32, #tpu.memory_space<smem>>
    %c18 = arith.constant 18 : index
    %74 = memref.load %arg0[%c18] : memref<78xf32, #tpu.memory_space<smem>>
    %75 = vector.broadcast %74 : f32 to vector<8x24xf32>
    %76 = arith.mulf %75, %16 : vector<8x24xf32>
    %77 = vector.broadcast %73 : f32 to vector<8x24xf32>
    %78 = arith.addf %77, %76 : vector<8x24xf32>
    %c19 = arith.constant 19 : index
    %79 = memref.load %arg0[%c19] : memref<78xf32, #tpu.memory_space<smem>>
    %80 = vector.broadcast %79 : f32 to vector<8x24xf32>
    %81 = arith.mulf %80, %30 : vector<8x24xf32>
    %82 = arith.addf %78, %81 : vector<8x24xf32>
    %c20 = arith.constant 20 : index
    %83 = memref.load %arg0[%c20] : memref<78xf32, #tpu.memory_space<smem>>
    %84 = vector.broadcast %83 : f32 to vector<8x24xf32>
    %85 = arith.mulf %84, %44 : vector<8x24xf32>
    %86 = arith.addf %82, %85 : vector<8x24xf32>
    %c33 = arith.constant 33 : index
    %87 = memref.load %arg0[%c33] : memref<78xf32, #tpu.memory_space<smem>>
    %c21 = arith.constant 21 : index
    %88 = memref.load %arg0[%c21] : memref<78xf32, #tpu.memory_space<smem>>
    %89 = vector.broadcast %88 : f32 to vector<8x24xf32>
    %90 = arith.mulf %89, %16 : vector<8x24xf32>
    %91 = vector.broadcast %87 : f32 to vector<8x24xf32>
    %92 = arith.addf %91, %90 : vector<8x24xf32>
    %c22 = arith.constant 22 : index
    %93 = memref.load %arg0[%c22] : memref<78xf32, #tpu.memory_space<smem>>
    %94 = vector.broadcast %93 : f32 to vector<8x24xf32>
    %95 = arith.mulf %94, %30 : vector<8x24xf32>
    %96 = arith.addf %92, %95 : vector<8x24xf32>
    %c23 = arith.constant 23 : index
    %97 = memref.load %arg0[%c23] : memref<78xf32, #tpu.memory_space<smem>>
    %98 = vector.broadcast %97 : f32 to vector<8x24xf32>
    %99 = arith.mulf %98, %44 : vector<8x24xf32>
    %100 = arith.addf %96, %99 : vector<8x24xf32>
    %c34 = arith.constant 34 : index
    %101 = memref.load %arg0[%c34] : memref<78xf32, #tpu.memory_space<smem>>
    %c24 = arith.constant 24 : index
    %102 = memref.load %arg0[%c24] : memref<78xf32, #tpu.memory_space<smem>>
    %103 = vector.broadcast %102 : f32 to vector<8x24xf32>
    %104 = arith.mulf %103, %16 : vector<8x24xf32>
    %105 = vector.broadcast %101 : f32 to vector<8x24xf32>
    %106 = arith.addf %105, %104 : vector<8x24xf32>
    %c25 = arith.constant 25 : index
    %107 = memref.load %arg0[%c25] : memref<78xf32, #tpu.memory_space<smem>>
    %108 = vector.broadcast %107 : f32 to vector<8x24xf32>
    %109 = arith.mulf %108, %30 : vector<8x24xf32>
    %110 = arith.addf %106, %109 : vector<8x24xf32>
    %c26 = arith.constant 26 : index
    %111 = memref.load %arg0[%c26] : memref<78xf32, #tpu.memory_space<smem>>
    %112 = vector.broadcast %111 : f32 to vector<8x24xf32>
    %113 = arith.mulf %112, %44 : vector<8x24xf32>
    %114 = arith.addf %110, %113 : vector<8x24xf32>
    %c35 = arith.constant 35 : index
    %115 = memref.load %arg0[%c35] : memref<78xf32, #tpu.memory_space<smem>>
    %c27 = arith.constant 27 : index
    %116 = memref.load %arg0[%c27] : memref<78xf32, #tpu.memory_space<smem>>
    %117 = vector.broadcast %116 : f32 to vector<8x24xf32>
    %118 = arith.mulf %117, %16 : vector<8x24xf32>
    %119 = vector.broadcast %115 : f32 to vector<8x24xf32>
    %120 = arith.addf %119, %118 : vector<8x24xf32>
    %c28 = arith.constant 28 : index
    %121 = memref.load %arg0[%c28] : memref<78xf32, #tpu.memory_space<smem>>
    %122 = vector.broadcast %121 : f32 to vector<8x24xf32>
    %123 = arith.mulf %122, %30 : vector<8x24xf32>
    %124 = arith.addf %120, %123 : vector<8x24xf32>
    %c29 = arith.constant 29 : index
    %125 = memref.load %arg0[%c29] : memref<78xf32, #tpu.memory_space<smem>>
    %126 = vector.broadcast %125 : f32 to vector<8x24xf32>
    %127 = arith.mulf %126, %44 : vector<8x24xf32>
    %128 = arith.addf %124, %127 : vector<8x24xf32>
    %cst = arith.constant 8.000000e+00 : f32
    %129 = vector.broadcast %cst : f32 to vector<8x24xf32>
    %130 = arith.mulf %16, %129 : vector<8x24xf32>
    %c0_6 = arith.constant 0 : index
    %c0_7 = arith.constant 0 : index
    %131 = vector.load %arg3[%c0_6, %c0_7] : memref<24x24xf32, #tpu.memory_space<vmem>>, vector<8x24xf32>
    tpu.vector_store %arg3[%c0_6, %c0_7], %130 {strides = array<i32>} : memref<24x24xf32, #tpu.memory_space<vmem>>, vector<8x24xf32>,
    %cst_8 = arith.constant 8.000000e+00 : f32
    %132 = vector.broadcast %cst_8 : f32 to vector<8x24xf32>
    %133 = arith.mulf %30, %132 : vector<8x24xf32>
    %c8_9 = arith.constant 8 : index
    %c0_10 = arith.constant 0 : index
    %134 = vector.load %arg3[%c8_9, %c0_10] : memref<24x24xf32, #tpu.memory_space<vmem>>, vector<8x24xf32>
    tpu.vector_store %arg3[%c8_9, %c0_10], %133 {strides = array<i32>} : memref<24x24xf32, #tpu.memory_space<vmem>>, vector<8x24xf32>,
    %cst_11 = arith.constant 8.000000e+00 : f32
    %135 = vector.broadcast %cst_11 : f32 to vector<8x24xf32>
    %136 = arith.mulf %44, %135 : vector<8x24xf32>
    %c16_12 = arith.constant 16 : index
    %c0_13 = arith.constant 0 : index
    %137 = vector.load %arg3[%c16_12, %c0_13] : memref<24x24xf32, #tpu.memory_space<vmem>>, vector<8x24xf32>
    tpu.vector_store %arg3[%c16_12, %c0_13], %136 {strides = array<i32>} : memref<24x24xf32, #tpu.memory_space<vmem>>, vector<8x24xf32>,
    %c0_14 = arith.constant 0 : index
    %c0_15 = arith.constant 0 : index
    %138 = vector.load %arg2[%c0_14, %c0_15] : memref<96x24xf32, #tpu.memory_space<vmem>>, vector<8x24xf32>
    tpu.vector_store %arg2[%c0_14, %c0_15], %58 {strides = array<i32>} : memref<96x24xf32, #tpu.memory_space<vmem>>, vector<8x24xf32>,
    %c8_16 = arith.constant 8 : index
    %c0_17 = arith.constant 0 : index
    %139 = vector.load %arg2[%c8_16, %c0_17] : memref<96x24xf32, #tpu.memory_space<vmem>>, vector<8x24xf32>
    tpu.vector_store %arg2[%c8_16, %c0_17], %72 {strides = array<i32>} : memref<96x24xf32, #tpu.memory_space<vmem>>, vector<8x24xf32>,
    %c16_18 = arith.constant 16 : index
    %c0_19 = arith.constant 0 : index
    %140 = vector.load %arg2[%c16_18, %c0_19] : memref<96x24xf32, #tpu.memory_space<vmem>>, vector<8x24xf32>
    tpu.vector_store %arg2[%c16_18, %c0_19], %86 {strides = array<i32>} : memref<96x24xf32, #tpu.memory_space<vmem>>, vector<8x24xf32>,
    %c24_20 = arith.constant 24 : index
    %c0_21 = arith.constant 0 : index
    %141 = vector.load %arg2[%c24_20, %c0_21] : memref<96x24xf32, #tpu.memory_space<vmem>>, vector<8x24xf32>
    tpu.vector_store %arg2[%c24_20, %c0_21], %100 {strides = array<i32>} : memref<96x24xf32, #tpu.memory_space<vmem>>, vector<8x24xf32>,
    %c32_22 = arith.constant 32 : index
    %c0_23 = arith.constant 0 : index
    %142 = vector.load %arg2[%c32_22, %c0_23] : memref<96x24xf32, #tpu.memory_space<vmem>>, vector<8x24xf32>
    tpu.vector_store %arg2[%c32_22, %c0_23], %114 {strides = array<i32>} : memref<96x24xf32, #tpu.memory_space<vmem>>, vector<8x24xf32>,
    %c40 = arith.constant 40 : index
    %c0_24 = arith.constant 0 : index
    %143 = vector.load %arg2[%c40, %c0_24] : memref<96x24xf32, #tpu.memory_space<vmem>>, vector<8x24xf32>
    tpu.vector_store %arg2[%c40, %c0_24], %128 {strides = array<i32>} : memref<96x24xf32, #tpu.memory_space<vmem>>, vector<8x24xf32>,
    %c72 = arith.constant 72 : index
    %144 = memref.load %arg0[%c72] : memref<78xf32, #tpu.memory_space<smem>>
    %c36 = arith.constant 36 : index
    %145 = memref.load %arg0[%c36] : memref<78xf32, #tpu.memory_space<smem>>
    %146 = vector.broadcast %145 : f32 to vector<8x24xf32>
    %147 = arith.mulf %146, %58 : vector<8x24xf32>
    %148 = vector.broadcast %144 : f32 to vector<8x24xf32>
    %149 = arith.addf %148, %147 : vector<8x24xf32>
    %c37 = arith.constant 37 : index
    %150 = memref.load %arg0[%c37] : memref<78xf32, #tpu.memory_space<smem>>
    %151 = vector.broadcast %150 : f32 to vector<8x24xf32>
    %152 = arith.mulf %151, %72 : vector<8x24xf32>
    %153 = arith.addf %149, %152 : vector<8x24xf32>
    %c38 = arith.constant 38 : index
    %154 = memref.load %arg0[%c38] : memref<78xf32, #tpu.memory_space<smem>>
    %155 = vector.broadcast %154 : f32 to vector<8x24xf32>
    %156 = arith.mulf %155, %86 : vector<8x24xf32>
    %157 = arith.addf %153, %156 : vector<8x24xf32>
    %c39 = arith.constant 39 : index
    %158 = memref.load %arg0[%c39] : memref<78xf32, #tpu.memory_space<smem>>
    %159 = vector.broadcast %158 : f32 to vector<8x24xf32>
    %160 = arith.mulf %159, %100 : vector<8x24xf32>
    %161 = arith.addf %157, %160 : vector<8x24xf32>
    %c40_25 = arith.constant 40 : index
    %162 = memref.load %arg0[%c40_25] : memref<78xf32, #tpu.memory_space<smem>>
    %163 = vector.broadcast %162 : f32 to vector<8x24xf32>
    %164 = arith.mulf %163, %114 : vector<8x24xf32>
    %165 = arith.addf %161, %164 : vector<8x24xf32>
    %c41 = arith.constant 41 : index
    %166 = memref.load %arg0[%c41] : memref<78xf32, #tpu.memory_space<smem>>
    %167 = vector.broadcast %166 : f32 to vector<8x24xf32>
    %168 = arith.mulf %167, %128 : vector<8x24xf32>
    %169 = arith.addf %165, %168 : vector<8x24xf32>
    %c73 = arith.constant 73 : index
    %170 = memref.load %arg0[%c73] : memref<78xf32, #tpu.memory_space<smem>>
    %c42 = arith.constant 42 : index
    %171 = memref.load %arg0[%c42] : memref<78xf32, #tpu.memory_space<smem>>
    %172 = vector.broadcast %171 : f32 to vector<8x24xf32>
    %173 = arith.mulf %172, %58 : vector<8x24xf32>
    %174 = vector.broadcast %170 : f32 to vector<8x24xf32>
    %175 = arith.addf %174, %173 : vector<8x24xf32>
    %c43 = arith.constant 43 : index
    %176 = memref.load %arg0[%c43] : memref<78xf32, #tpu.memory_space<smem>>
    %177 = vector.broadcast %176 : f32 to vector<8x24xf32>
    %178 = arith.mulf %177, %72 : vector<8x24xf32>
    %179 = arith.addf %175, %178 : vector<8x24xf32>
    %c44 = arith.constant 44 : index
    %180 = memref.load %arg0[%c44] : memref<78xf32, #tpu.memory_space<smem>>
    %181 = vector.broadcast %180 : f32 to vector<8x24xf32>
    %182 = arith.mulf %181, %86 : vector<8x24xf32>
    %183 = arith.addf %179, %182 : vector<8x24xf32>
    %c45 = arith.constant 45 : index
    %184 = memref.load %arg0[%c45] : memref<78xf32, #tpu.memory_space<smem>>
    %185 = vector.broadcast %184 : f32 to vector<8x24xf32>
    %186 = arith.mulf %185, %100 : vector<8x24xf32>
    %187 = arith.addf %183, %186 : vector<8x24xf32>
    %c46 = arith.constant 46 : index
    %188 = memref.load %arg0[%c46] : memref<78xf32, #tpu.memory_space<smem>>
    %189 = vector.broadcast %188 : f32 to vector<8x24xf32>
    %190 = arith.mulf %189, %114 : vector<8x24xf32>
    %191 = arith.addf %187, %190 : vector<8x24xf32>
    %c47 = arith.constant 47 : index
    %192 = memref.load %arg0[%c47] : memref<78xf32, #tpu.memory_space<smem>>
    %193 = vector.broadcast %192 : f32 to vector<8x24xf32>
    %194 = arith.mulf %193, %128 : vector<8x24xf32>
    %195 = arith.addf %191, %194 : vector<8x24xf32>
    %c74 = arith.constant 74 : index
    %196 = memref.load %arg0[%c74] : memref<78xf32, #tpu.memory_space<smem>>
    %c48 = arith.constant 48 : index
    %197 = memref.load %arg0[%c48] : memref<78xf32, #tpu.memory_space<smem>>
    %198 = vector.broadcast %197 : f32 to vector<8x24xf32>
    %199 = arith.mulf %198, %58 : vector<8x24xf32>
    %200 = vector.broadcast %196 : f32 to vector<8x24xf32>
    %201 = arith.addf %200, %199 : vector<8x24xf32>
    %c49 = arith.constant 49 : index
    %202 = memref.load %arg0[%c49] : memref<78xf32, #tpu.memory_space<smem>>
    %203 = vector.broadcast %202 : f32 to vector<8x24xf32>
    %204 = arith.mulf %203, %72 : vector<8x24xf32>
    %205 = arith.addf %201, %204 : vector<8x24xf32>
    %c50 = arith.constant 50 : index
    %206 = memref.load %arg0[%c50] : memref<78xf32, #tpu.memory_space<smem>>
    %207 = vector.broadcast %206 : f32 to vector<8x24xf32>
    %208 = arith.mulf %207, %86 : vector<8x24xf32>
    %209 = arith.addf %205, %208 : vector<8x24xf32>
    %c51 = arith.constant 51 : index
    %210 = memref.load %arg0[%c51] : memref<78xf32, #tpu.memory_space<smem>>
    %211 = vector.broadcast %210 : f32 to vector<8x24xf32>
    %212 = arith.mulf %211, %100 : vector<8x24xf32>
    %213 = arith.addf %209, %212 : vector<8x24xf32>
    %c52 = arith.constant 52 : index
    %214 = memref.load %arg0[%c52] : memref<78xf32, #tpu.memory_space<smem>>
    %215 = vector.broadcast %214 : f32 to vector<8x24xf32>
    %216 = arith.mulf %215, %114 : vector<8x24xf32>
    %217 = arith.addf %213, %216 : vector<8x24xf32>
    %c53 = arith.constant 53 : index
    %218 = memref.load %arg0[%c53] : memref<78xf32, #tpu.memory_space<smem>>
    %219 = vector.broadcast %218 : f32 to vector<8x24xf32>
    %220 = arith.mulf %219, %128 : vector<8x24xf32>
    %221 = arith.addf %217, %220 : vector<8x24xf32>
    %c75 = arith.constant 75 : index
    %222 = memref.load %arg0[%c75] : memref<78xf32, #tpu.memory_space<smem>>
    %c54 = arith.constant 54 : index
    %223 = memref.load %arg0[%c54] : memref<78xf32, #tpu.memory_space<smem>>
    %224 = vector.broadcast %223 : f32 to vector<8x24xf32>
    %225 = arith.mulf %224, %58 : vector<8x24xf32>
    %226 = vector.broadcast %222 : f32 to vector<8x24xf32>
    %227 = arith.addf %226, %225 : vector<8x24xf32>
    %c55 = arith.constant 55 : index
    %228 = memref.load %arg0[%c55] : memref<78xf32, #tpu.memory_space<smem>>
    %229 = vector.broadcast %228 : f32 to vector<8x24xf32>
    %230 = arith.mulf %229, %72 : vector<8x24xf32>
    %231 = arith.addf %227, %230 : vector<8x24xf32>
    %c56 = arith.constant 56 : index
    %232 = memref.load %arg0[%c56] : memref<78xf32, #tpu.memory_space<smem>>
    %233 = vector.broadcast %232 : f32 to vector<8x24xf32>
    %234 = arith.mulf %233, %86 : vector<8x24xf32>
    %235 = arith.addf %231, %234 : vector<8x24xf32>
    %c57 = arith.constant 57 : index
    %236 = memref.load %arg0[%c57] : memref<78xf32, #tpu.memory_space<smem>>
    %237 = vector.broadcast %236 : f32 to vector<8x24xf32>
    %238 = arith.mulf %237, %100 : vector<8x24xf32>
    %239 = arith.addf %235, %238 : vector<8x24xf32>
    %c58 = arith.constant 58 : index
    %240 = memref.load %arg0[%c58] : memref<78xf32, #tpu.memory_space<smem>>
    %241 = vector.broadcast %240 : f32 to vector<8x24xf32>
    %242 = arith.mulf %241, %114 : vector<8x24xf32>
    %243 = arith.addf %239, %242 : vector<8x24xf32>
    %c59 = arith.constant 59 : index
    %244 = memref.load %arg0[%c59] : memref<78xf32, #tpu.memory_space<smem>>
    %245 = vector.broadcast %244 : f32 to vector<8x24xf32>
    %246 = arith.mulf %245, %128 : vector<8x24xf32>
    %247 = arith.addf %243, %246 : vector<8x24xf32>
    %c76 = arith.constant 76 : index
    %248 = memref.load %arg0[%c76] : memref<78xf32, #tpu.memory_space<smem>>
    %c60 = arith.constant 60 : index
    %249 = memref.load %arg0[%c60] : memref<78xf32, #tpu.memory_space<smem>>
    %250 = vector.broadcast %249 : f32 to vector<8x24xf32>
    %251 = arith.mulf %250, %58 : vector<8x24xf32>
    %252 = vector.broadcast %248 : f32 to vector<8x24xf32>
    %253 = arith.addf %252, %251 : vector<8x24xf32>
    %c61 = arith.constant 61 : index
    %254 = memref.load %arg0[%c61] : memref<78xf32, #tpu.memory_space<smem>>
    %255 = vector.broadcast %254 : f32 to vector<8x24xf32>
    %256 = arith.mulf %255, %72 : vector<8x24xf32>
    %257 = arith.addf %253, %256 : vector<8x24xf32>
    %c62 = arith.constant 62 : index
    %258 = memref.load %arg0[%c62] : memref<78xf32, #tpu.memory_space<smem>>
    %259 = vector.broadcast %258 : f32 to vector<8x24xf32>
    %260 = arith.mulf %259, %86 : vector<8x24xf32>
    %261 = arith.addf %257, %260 : vector<8x24xf32>
    %c63 = arith.constant 63 : index
    %262 = memref.load %arg0[%c63] : memref<78xf32, #tpu.memory_space<smem>>
    %263 = vector.broadcast %262 : f32 to vector<8x24xf32>
    %264 = arith.mulf %263, %100 : vector<8x24xf32>
    %265 = arith.addf %261, %264 : vector<8x24xf32>
    %c64 = arith.constant 64 : index
    %266 = memref.load %arg0[%c64] : memref<78xf32, #tpu.memory_space<smem>>
    %267 = vector.broadcast %266 : f32 to vector<8x24xf32>
    %268 = arith.mulf %267, %114 : vector<8x24xf32>
    %269 = arith.addf %265, %268 : vector<8x24xf32>
    %c65 = arith.constant 65 : index
    %270 = memref.load %arg0[%c65] : memref<78xf32, #tpu.memory_space<smem>>
    %271 = vector.broadcast %270 : f32 to vector<8x24xf32>
    %272 = arith.mulf %271, %128 : vector<8x24xf32>
    %273 = arith.addf %269, %272 : vector<8x24xf32>
    %c77 = arith.constant 77 : index
    %274 = memref.load %arg0[%c77] : memref<78xf32, #tpu.memory_space<smem>>
    %c66 = arith.constant 66 : index
    %275 = memref.load %arg0[%c66] : memref<78xf32, #tpu.memory_space<smem>>
    %276 = vector.broadcast %275 : f32 to vector<8x24xf32>
    %277 = arith.mulf %276, %58 : vector<8x24xf32>
    %278 = vector.broadcast %274 : f32 to vector<8x24xf32>
    %279 = arith.addf %278, %277 : vector<8x24xf32>
    %c67 = arith.constant 67 : index
    %280 = memref.load %arg0[%c67] : memref<78xf32, #tpu.memory_space<smem>>
    %281 = vector.broadcast %280 : f32 to vector<8x24xf32>
    %282 = arith.mulf %281, %72 : vector<8x24xf32>
    %283 = arith.addf %279, %282 : vector<8x24xf32>
    %c68 = arith.constant 68 : index
    %284 = memref.load %arg0[%c68] : memref<78xf32, #tpu.memory_space<smem>>
    %285 = vector.broadcast %284 : f32 to vector<8x24xf32>
    %286 = arith.mulf %285, %86 : vector<8x24xf32>
    %287 = arith.addf %283, %286 : vector<8x24xf32>
    %c69 = arith.constant 69 : index
    %288 = memref.load %arg0[%c69] : memref<78xf32, #tpu.memory_space<smem>>
    %289 = vector.broadcast %288 : f32 to vector<8x24xf32>
    %290 = arith.mulf %289, %100 : vector<8x24xf32>
    %291 = arith.addf %287, %290 : vector<8x24xf32>
    %c70 = arith.constant 70 : index
    %292 = memref.load %arg0[%c70] : memref<78xf32, #tpu.memory_space<smem>>
    %293 = vector.broadcast %292 : f32 to vector<8x24xf32>
    %294 = arith.mulf %293, %114 : vector<8x24xf32>
    %295 = arith.addf %291, %294 : vector<8x24xf32>
    %c71 = arith.constant 71 : index
    %296 = memref.load %arg0[%c71] : memref<78xf32, #tpu.memory_space<smem>>
    %297 = vector.broadcast %296 : f32 to vector<8x24xf32>
    %298 = arith.mulf %297, %128 : vector<8x24xf32>
    %299 = arith.addf %295, %298 : vector<8x24xf32>
    %c0_26 = arith.constant 0 : index
    %c0_27 = arith.constant 0 : index
    %300 = vector.load %arg2[%c0_26, %c0_27] : memref<96x24xf32, #tpu.memory_space<vmem>>, vector<48x24xf32>
    %c0_28 = arith.constant 0 : index
    %c0_29 = arith.constant 0 : index
    %301 = vector.load %arg3[%c0_28, %c0_29] : memref<24x24xf32, #tpu.memory_space<vmem>>, vector<24x24xf32>
    %cst_30 = arith.constant dense<0.000000e+00> : vector<48x24xf32>
    %302 = tpu.matmul %300, %301, %cst_30 {dimension_numbers = #tpu.dot_dimension_numbers<[1], [0], [0], [1], [0, 0, 1, 1], [], []>} : vector<48x24xf32>, vector<24x24xf32>, vector<48x24xf32> -> vector<48x24xf32>
    %303 = vector.extract_strided_slice %302 {offsets = [0, 0], sizes = [8, 24], strides = [1, 1]} : vector<48x24xf32> to vector<8x24xf32>
    %304 = arith.addf %303, %169 : vector<8x24xf32>
    %c48_31 = arith.constant 48 : index
    %c0_32 = arith.constant 0 : index
    %305 = vector.load %arg2[%c48_31, %c0_32] : memref<96x24xf32, #tpu.memory_space<vmem>>, vector<8x24xf32>
    tpu.vector_store %arg2[%c48_31, %c0_32], %304 {strides = array<i32>} : memref<96x24xf32, #tpu.memory_space<vmem>>, vector<8x24xf32>,
    %306 = vector.extract_strided_slice %302 {offsets = [8, 0], sizes = [8, 24], strides = [1, 1]} : vector<48x24xf32> to vector<8x24xf32>
    %307 = arith.addf %306, %195 : vector<8x24xf32>
    %c56_33 = arith.constant 56 : index
    %c0_34 = arith.constant 0 : index
    %308 = vector.load %arg2[%c56_33, %c0_34] : memref<96x24xf32, #tpu.memory_space<vmem>>, vector<8x24xf32>
    tpu.vector_store %arg2[%c56_33, %c0_34], %307 {strides = array<i32>} : memref<96x24xf32, #tpu.memory_space<vmem>>, vector<8x24xf32>,
    %309 = vector.extract_strided_slice %302 {offsets = [16, 0], sizes = [8, 24], strides = [1, 1]} : vector<48x24xf32> to vector<8x24xf32>
    %310 = arith.addf %309, %221 : vector<8x24xf32>
    %c64_35 = arith.constant 64 : index
    %c0_36 = arith.constant 0 : index
    %311 = vector.load %arg2[%c64_35, %c0_36] : memref<96x24xf32, #tpu.memory_space<vmem>>, vector<8x24xf32>
    tpu.vector_store %arg2[%c64_35, %c0_36], %310 {strides = array<i32>} : memref<96x24xf32, #tpu.memory_space<vmem>>, vector<8x24xf32>,
    %312 = vector.extract_strided_slice %302 {offsets = [24, 0], sizes = [8, 24], strides = [1, 1]} : vector<48x24xf32> to vector<8x24xf32>
    %313 = arith.addf %312, %247 : vector<8x24xf32>
    %c72_37 = arith.constant 72 : index
    %c0_38 = arith.constant 0 : index
    %314 = vector.load %arg2[%c72_37, %c0_38] : memref<96x24xf32, #tpu.memory_space<vmem>>, vector<8x24xf32>
    tpu.vector_store %arg2[%c72_37, %c0_38], %313 {strides = array<i32>} : memref<96x24xf32, #tpu.memory_space<vmem>>, vector<8x24xf32>,
    %315 = vector.extract_strided_slice %302 {offsets = [32, 0], sizes = [8, 24], strides = [1, 1]} : vector<48x24xf32> to vector<8x24xf32>
    %316 = arith.addf %315, %273 : vector<8x24xf32>
    %c80 = arith.constant 80 : index
    %c0_39 = arith.constant 0 : index
    %317 = vector.load %arg2[%c80, %c0_39] : memref<96x24xf32, #tpu.memory_space<vmem>>, vector<8x24xf32>
    tpu.vector_store %arg2[%c80, %c0_39], %316 {strides = array<i32>} : memref<96x24xf32, #tpu.memory_space<vmem>>, vector<8x24xf32>,
    %318 = vector.extract_strided_slice %302 {offsets = [40, 0], sizes = [8, 24], strides = [1, 1]} : vector<48x24xf32> to vector<8x24xf32>
    %319 = arith.addf %318, %299 : vector<8x24xf32>
    %c88 = arith.constant 88 : index
    %c0_40 = arith.constant 0 : index
    %320 = vector.load %arg2[%c88, %c0_40] : memref<96x24xf32, #tpu.memory_space<vmem>>, vector<8x24xf32>
    tpu.vector_store %arg2[%c88, %c0_40], %319 {strides = array<i32>} : memref<96x24xf32, #tpu.memory_space<vmem>>, vector<8x24xf32>,
    return
  }
}

</mosaic_0001>

<bundles_post_ra>
// kernel: model_forward.1
= control target key start
LH: loop header
LB: loop body
LE: loop exit
PB: predicated region body
PF: predicated region fallthrough
CT: control target
= control target key end

     0   :  { %7 = vsyncpa [#allocation5], 0  ;;  %s977_s0 = inlined_call_operand.vmem [shape: f32[78], index: 0, kind: input, shape index: {}]   ;;  %s978_s1 = inlined_call_operand.vmem [shape: f32[24,24], index: 1, kind: input, shape index: {}]   ;;  %s979_s2 = inlined_call_operand.hbm [shape: f32[96,24], index: 2, kind: output, shape index: {}]  }
   0x1   :  { %8 = vsyncpa [#allocation4], 0  ;;  %s15_s11 = sshll.u32 %s977_s0, 4  ;;  %s16_s11 = int_to_ptr.vmem [resolvable:$true] %s15_s11 }
   0x2   :  { %s593_s12 = scalar_lea.vmem %s16_s11, 16  ;;  %p598_p1 = scmp.lt.s32.totalorder %s16_s11, %s16_s11 }
   0x3   :  { %p594_p0 = scmp.ne.s32.totalorder %s16_s11, %s593_s12  ;;  %p599_p2 = scmp.lt.s32.totalorder %s593_s12, %s593_s12 }
   0x5   :  { %p600_p3 = por %p599_p2, %p598_p1 }
   0x7   :  { %p601_p4 = pnand %p600_p3, %p594_p0 }
   0x9   :  { %604 = shalt.err (!%p601_p4)
}
   0xa   :  { %s631_s13 = smov [#allocation3]  }
   0xb   :  { %18 = dma.vmem_to_smem %s16_s11, 16, %s631_s13, [#allocation5]  }
   0xc   :  { %627 = dma.done.wait [#allocation5], 16  }
   0xd   :  { %628 = vsyncadd [#allocation5], 4294967280 }
   0xe   :  { %24 = sfence }
   0xf   :  { %s653_s14 = sld [smem:[#allocation3 + $0x9]]  ;;  %s29_s15 = sld [smem:[#allocation3]]  ;;  %v25_v0 = vld [vmem:[%s978_s1] sm:$0xff]  ;;  %v26_v1 = vld [vmem:[%s978_s1 + $0x8] sm:$0xff]  ;;  %v27_v2 = vld [vmem:[%s978_s1 + $0x10] sm:$0xff]  ;;  %vm155_vm0 = vcmask 195584  }
  0x10   :  { %s475_s16 = sld [smem:[#allocation3 + $0x1]]  ;;  %s476_s17 = sld [smem:[#allocation3 + $0x2]] }
  0x11   :  { %s655_s0 = sld [smem:[#allocation3 + $0xa]]  ;;  %s478_s18 = sld [smem:[#allocation3 + $0x3]] }
  0x12   :  { %s479_s19 = sld [smem:[#allocation3 + $0x4]]  ;;  %s657_s20 = sld [smem:[#allocation3 + $0x5]] }
  0x13   :  { %s659_s21 = sld [smem:[#allocation3 + $0xb]]  ;;  %s667_s26 = sld [smem:[#allocation3 + $0x6]] }
  0x14   :  { %s669_s27 = sld [smem:[#allocation3 + $0x7]]  ;;  %s674_s30 = sld [smem:[#allocation3 + $0x8]] }
  0x15   :  { %s676_s3 = sld [smem:[#allocation3 + $0x20]]  ;;  %v30_v3 = vstv %s29_s15  ;;  %v32_v4 = vstv %s653_s14  ;;  %s679_s4 = sld [smem:[#allocation3 + $0x12]] }
  0x16   :  { %v35_v5 = vstv %s475_s16  ;;  %s681_s5 = sld [smem:[#allocation3 + $0x13]]  ;;  %v31_v6 = vmul.f32 %v30_v3, %v25_v0  ;;  %v39_v8 = vstv %s476_s17  ;;  %s683_s6 = sld [smem:[#allocation3 + $0x14]] }
  0x17   :  { %v36_v7 = vmul.f32 %v35_v5, %v26_v1  ;;  %s685_s1 = sld [smem:[#allocation3 + $0x21]]  ;;  %v40_v9 = vmul.f32 %v39_v8, %v27_v2  ;;  %v44_v10 = vstv %s478_s18  ;;  %v46_v11 = vstv %s655_s0  ;;  %s688_s7 = sld [smem:[#allocation3 + $0x15]] }
  0x18   :  { %v49_v12 = vstv %s479_s19  ;;  %s690_s8 = sld [smem:[#allocation3 + $0x16]]  ;;  %v33_v13 = vadd.f32 %v32_v4, %v31_v6  ;;  %v45_v14 = vmul.f32 %v44_v10, %v25_v0  ;;  %v53_v16 = vstv %s657_s20  ;;  %s693_s9 = sld [smem:[#allocation3 + $0x17]] }
  0x19   :  { %v50_v15 = vmul.f32 %v49_v12, %v26_v1  ;;  %s695_s10 = sld [smem:[#allocation3 + $0x1e]]  ;;  %v54_v17 = vmul.f32 %v53_v16, %v27_v2  ;;  %v58_v18 = vstv %s667_s26  ;;  %v60_v19 = vstv %s659_s21  ;;  %s700_s11 = sld [smem:[#allocation3 + $0xc]] }
  0x1a   :  { %v63_v20 = vstv %s669_s27  ;;  %s702_s12 = sld [smem:[#allocation3 + $0xd]]  ;;  %v37_v21 = vadd.f32 %v36_v7, %v33_v13  ;;  %v47_v22 = vadd.f32 %v46_v11, %v45_v14  ;;  %v59_v23 = vmul.f32 %v58_v18, %v25_v0  ;;  %s708_s13 = sld [smem:[#allocation3 + $0xe]] }
  0x1b   :  { %v64_v24 = vmul.f32 %v63_v20, %v26_v1  ;;  %v67_v25 = vstv %s674_s30  ;;  %v100_v26 = vstv %s679_s4  ;;  %v102_v27 = vstv %s676_s3  ;;  %s712_s14 = sld [smem:[#allocation3 + $0x1f]]  ;;  %s720_s16 = sld [smem:[#allocation3 + $0x10]] }
  0x1c   :  { %v105_v28 = vstv %s681_s5  ;;  %v710_v29 = vadd.f32 %v40_v9, %v37_v21  ;;  %v51_v30 = vadd.f32 %v50_v15, %v47_v22  ;;  %v61_v31 = vadd.f32 %v60_v19, %v59_v23  ;;  %s714_s15 = sld [smem:[#allocation3 + $0xf]]  ;;  %s722_s17 = sld [smem:[#allocation3 + $0x11]] }
  0x1d   :  { %v68_v32 = vmul.f32 %v67_v25, %v27_v2  ;;  %v109_v33 = vstv %s683_s6  ;;  %v114_v34 = vstv %s688_s7  ;;  %v116_v35 = vstv %s685_s1  ;;  %s728_s0 = sld [smem:[#allocation3 + $0x22]]  ;;  %s730_s18 = sld [smem:[#allocation3 + $0x18]] }
  0x1e   :  { %v119_v36 = vstv %s690_s8  ;;  %v724_v37 = vadd.f32 %v54_v17, %v51_v30  ;;  %v154_v38 = vmul.f32 8.0, %v710_v29  ;;  %v65_v39 = vadd.f32 %v64_v24, %v61_v31  ;;  %s736_s19 = sld [smem:[#allocation3 + $0x19]]  ;;  %s738_s20 = sld [smem:[#allocation3 + $0x1a]] }
  0x1f   :  { %v101_v40 = vmul.f32 %v100_v26, %v710_v29  ;;  %v115_v41 = vmul.f32 %v114_v34, %v710_v29  ;;  %v123_v42 = vstv %s693_s9  ;;  %v72_v43 = vstv %s700_s11  ;;  %s743_s21 = sld [smem:[#allocation3 + $0x23]]  ;;  %s751_s23 = sld [smem:[#allocation3 + $0x1c]] }
  0x20   :  { %v74_v44 = vstv %s695_s10  ;;  %156 = vst.msk [vmem:[#allocation2] sm:$0xff] %vm155_vm0, %v154_v38  ;;  %v157_v45 = vmul.f32 8.0, %v724_v37  ;;  %v69_v46 = vadd.f32 %v68_v32, %v65_v39  ;;  %v106_v48 = vmul.f32 %v105_v28, %v724_v37  ;;  %s745_s22 = sld [smem:[#allocation3 + $0x1b]]  ;;  %s753_s24 = sld [smem:[#allocation3 + $0x1d]] }
  0x21   :  { %v103_v47 = vadd.f32 %v102_v27, %v101_v40  ;;  %v117_v49 = vadd.f32 %v116_v35, %v115_v41  ;;  %v120_v50 = vmul.f32 %v119_v36, %v724_v37  ;;  %v73_v51 = vmul.f32 %v72_v43, %v710_v29  ;;  %s531_s25 = sld [smem:[#allocation3 + $0x36]]  ;;  %s524_s26 = sld [smem:[#allocation3 + $0x30]] }
  0x22   :  { %v77_v52 = vstv %s702_s12  ;;  %158 = vst.msk [vmem:[#allocation2 + $0x8] sm:$0xff] %vm155_vm0, %v157_v45  ;;  %v159_v53 = vmul.f32 8.0, %v69_v46  ;;  %v110_v55 = vmul.f32 %v109_v33, %v69_v46  ;;  %v124_v56 = vmul.f32 %v123_v42, %v69_v46  ;;  %s530_s27 = sld [smem:[#allocation3 + $0x4b]]  ;;  %s532_s28 = sld [smem:[#allocation3 + $0x37]] }
  0x23   :  { %v107_v54 = vadd.f32 %v106_v48, %v103_v47  ;;  %v121_v57 = vadd.f32 %v120_v50, %v117_v49  ;;  %v75_v58 = vadd.f32 %v74_v44, %v73_v51  ;;  %v78_v59 = vmul.f32 %v77_v52, %v724_v37  ;;  %s806_s29 = sld [smem:[#allocation3 + $0x4a]]  ;;  %s808_s30 = sld [smem:[#allocation3 + $0x31]] }
  0x24   :  { %v81_v60 = vstv %s708_s13  ;;  %160 = vst.msk [vmem:[#allocation2 + $0x10] sm:$0xff] %vm155_vm0, %v159_v53  ;;  %v86_v63 = vstv %s714_s15  ;;  %v88_v0 = vstv %s712_s14  ;;  %v91_v4 = vstv %s720_s16  ;;  %s810_s3 = sld [smem:[#allocation3 + $0x38]]  ;;  %s812_s4 = sld [smem:[#allocation3 + $0x2a]] }
  0x25   :  { %v758_v61 = vadd.f32 %v110_v55, %v107_v54  ;;  %v82_v62 = vmul.f32 %v81_v60, %v69_v46  ;;  %v762_v1 = vadd.f32 %v124_v56, %v121_v57  ;;  %v79_v2 = vadd.f32 %v78_v59, %v75_v58  ;;  %s814_s5 = sld [smem:[#allocation3 + $0x39]]  ;;  %s816_s6 = sld [smem:[#allocation3 + $0x24]] }
  0x26   :  { %v87_v3 = vmul.f32 %v86_v63, %v710_v29  ;;  %v92_v5 = vmul.f32 %v91_v4, %v724_v37  ;;  %v95_v6 = vstv %s722_s17  ;;  %v128_v7 = vstv %s730_s18  ;;  %s818_s1 = sld [smem:[#allocation3 + $0x3a]]  ;;  %s825_s9 = sld [smem:[#allocation3 + $0x49]] }
  0x27   :  { %163 = vst.msk [vmem:[#allocation6 + $0x10] sm:$0xff] %vm155_vm0, %v758_v61  ;;  %v130_v8 = vstv %s728_s0  ;;  %v329_v9 = vld [vmem:[#allocation2] sm:$0xff]  ;;  %164 = vst.msk [vmem:[#allocation6 + $0x18] sm:$0xff] %vm155_vm0, %v762_v1  ;;  %v774_v10 = vadd.f32 %v82_v62, %v79_v2  ;;  %v96_v12 = vmul.f32 %v95_v6, %v69_v46  ;;  %v129_v13 = vmul.f32 %v128_v7, %v710_v29  ;;  %s821_s7 = sld [smem:[#allocation3 + $0x32]]  ;;  %s827_s10 = sld [smem:[#allocation3 + $0x2b]] }
  0x28   :  { %v89_v11 = vadd.f32 %v88_v0, %v87_v3  ;;  %v133_v14 = vstv %s736_s19  ;;  %v137_v15 = vstv %s738_s20  ;;  %v142_v16 = vstv %s745_s22  ;;  %s823_s8 = sld [smem:[#allocation3 + $0x42]]  ;;  %s829_s11 = sld [smem:[#allocation3 + $0x48]] }
  0x29   :  { %v144_v17 = vstv %s743_s21  ;;  %v330_v18 = vld [vmem:[#allocation2 + $0x8] sm:$0xff]  ;;  %161 = vst.msk [vmem:[#allocation6] sm:$0xff] %vm155_vm0, %v774_v10  ;;  %v131_v20 = vadd.f32 %v130_v8, %v129_v13  ;;  %v134_v21 = vmul.f32 %v133_v14, %v724_v37  ;;  %v138_v22 = vmul.f32 %v137_v15, %v69_v46  ;;  %s831_s12 = sld [smem:[#allocation3 + $0x25]]  ;;  %s833_s13 = sld [smem:[#allocation3 + $0x3b]] }
  0x2a   :  { %v93_v19 = vadd.f32 %v92_v5, %v89_v11  ;;  %v581_v23 = vpack.c.bf16 %v330_v18, %v329_v9  ;;  %v143_v24 = vmul.f32 %v142_v16, %v710_v29  ;;  %v147_v25 = vstv %s751_s23  ;;  %s836_s14 = sld [smem:[#allocation3 + $0x3c]]  ;;  %s841_s15 = sld [smem:[#allocation3 + $0x33]] }
  0x2b   :  { %v151_v26 = vstv %s753_s24  ;;  %v331_v27 = vld [vmem:[#allocation2 + $0x10] sm:$0xff]  ;;  %v135_v30 = vadd.f32 %v134_v21, %v131_v20  ;;  %v148_v31 = vmul.f32 %v147_v25, %v724_v37  ;;  %v247_v42 = vstv %s531_s25  ;;  %s845_s16 = sld [smem:[#allocation3 + $0x2c]]  ;;  %s847_s17 = sld [smem:[#allocation3 + $0x26]] }
  0x2c   :  { %v787_v28 = vadd.f32 %v96_v12, %v93_v19  ;;  %585 = vmatprep.subr.bf16.mxu1 %v581_v23  ;;  %582 = vmatprep.subr.bf16.mxu0 %v581_v23  ;;  %v145_v32 = vadd.f32 %v144_v17, %v143_v24  ;;  %v152_v33 = vmul.f32 %v151_v26, %v69_v46  ;;  %v221_v44 = vstv %s524_s26  ;;  %s851_s0 = sld [smem:[#allocation3 + $0x4d]]  ;;  %s853_s18 = sld [smem:[#allocation3 + $0x43]] }
  0x2d   :  { %587 = vmatpush3.bf16.msra.mxu1 %v581_v23  ;;  %584 = vmatpush3.bf16.msra.mxu0 %v581_v23  ;;  %v792_v35 = vadd.f32 %v138_v22, %v135_v30  ;;  %v248_v43 = vmul.f32 %v247_v42, %v774_v10  ;;  %v249_v45 = vstv %s530_s27  ;;  %v252_v46 = vstv %s532_s28  ;;  %s857_s19 = sld [smem:[#allocation3 + $0x4c]]  ;;  %s859_s20 = sld [smem:[#allocation3 + $0x3d]] }
  0x2e   :  { %v325_v34 = vld [vmem:[#allocation6 + $0x10] sm:$0xff]  ;;  %162 = vst.msk [vmem:[#allocation6 + $0x8] sm:$0xff] %vm155_vm0, %v787_v28  ;;  %586 = vmatprep.subr.mxu1 %v331_v27  ;;  %v149_v29 = vadd.f32 %v148_v31, %v145_v32  ;;  %v326_v36 = vld [vmem:[#allocation6 + $0x18] sm:$0xff]  ;;  %570 = vmatprep.subr.mxu0 %v331_v27  ;;  %v222_v47 = vmul.f32 %v221_v44, %v774_v10  ;;  %v223_v50 = vstv %s806_s29  ;;  %v226_v51 = vstv %s808_s30  ;;  %s863_s21 = sld [smem:[#allocation3 + $0x34]]  ;;  %s866_s22 = sld [smem:[#allocation3 + $0x2d]] }
  0x2f   :  { %575 = vmatprep.mubr.msk.f32.mxu1 %vm155_vm0, %v325_v34  ;;  %165 = vst.msk [vmem:[#allocation6 + $0x20] sm:$0xff] %vm155_vm0, %v792_v35  ;;  %v250_v48 = vadd.f32 %v249_v45, %v248_v43  ;;  %v253_v49 = vmul.f32 %v252_v46, %v787_v28  ;;  %v256_v52 = vstv %s810_s3  ;;  %v195_v53 = vstv %s812_s4  ;;  %s877_s23 = sld [smem:[#allocation3 + $0x27]]  ;;  %s880_s24 = sld [smem:[#allocation3 + $0x44]] }
  0x30   :  { %v323_v37 = vld [vmem:[#allocation6] sm:$0xff]  ;;  %v797_v38 = vadd.f32 %v152_v33, %v149_v29  ;;  %v260_v54 = vstv %s814_s5  ;;  %v169_v55 = vstv %s816_s6  ;;  %v264_v56 = vstv %s818_s1  ;;  %s885_s25 = sld [smem:[#allocation3 + $0x3e]]  ;;  %s888_s26 = sld [smem:[#allocation3 + $0x35]] }
  0x31   :  { %588 = vmatpush3.msra.mxu1 %v331_v27  ;;  %571 = vmatpush3.msra.mxu0 %v331_v27  ;;  %v224_v57 = vadd.f32 %v223_v50, %v222_v47  ;;  %v227_v58 = vmul.f32 %v226_v51, %v787_v28  ;;  %v254_v59 = vadd.f32 %v253_v49, %v250_v48  ;;  %v230_v62 = vstv %s821_s7  ;;  %s891_s27 = sld [smem:[#allocation3 + $0x2e]]  ;;  %s897_s28 = sld [smem:[#allocation3 + $0x28]] }
  0x32   :  { %576 = vmatmul.mubr.msk.f32.vlgmr.msra.gmra.mrb[0].mxu1 %vm155_vm0, %v326_v36  ;;  %572 = vmatprep.mubr.msk.f32.mxu0 %vm155_vm0, %v323_v37  ;;  %166 = vst.msk [vmem:[#allocation6 + $0x28] sm:$0xff] %vm155_vm0, %v797_v38  ;;  %v257_v60 = vmul.f32 %v256_v52, %v758_v61  ;;  %v196_v63 = vmul.f32 %v195_v53, %v774_v10  ;;  %v197_v2 = vstv %s825_s9  ;;  %v200_v3 = vstv %s827_s10  ;;  %s901_s29 = sld [smem:[#allocation3 + $0x45]]  ;;  %s907_s30 = sld [smem:[#allocation3 + $0x3f]] }
  0x33   :  { %v261_v0 = vmul.f32 %v260_v54, %v762_v1  ;;  %v170_v4 = vmul.f32 %v169_v55, %v774_v10  ;;  %v873_v5 = vmul.f32 %v264_v56, %v792_v35  ;;  %v171_v6 = vstv %s829_s11  ;;  %s912_s3 = sld [smem:[#allocation3 + $0x2f]]  ;;  %s917_s4 = sld [smem:[#allocation3 + $0x29]] }
  0x34   :  { %v174_v7 = vstv %s831_s12  ;;  %v299_v8 = vstv %s823_s8  ;;  %v268_v9 = vstv %s833_s13  ;;  %v228_v11 = vadd.f32 %v227_v58, %v224_v57  ;;  %s920_s5 = sld [smem:[#allocation3 + $0x46]]  ;;  %s925_s6 = sld [smem:[#allocation3 + $0x40]] }
  0x35   :  { %v324_v39 = vld [vmem:[#allocation6 + $0x8] sm:$0xff]  ;;  %v231_v12 = vmul.f32 %v230_v62, %v758_v61  ;;  %v273_v13 = vstv %s836_s14  ;;  %v258_v14 = vadd.f32 %v257_v60, %v254_v59  ;;  %v234_v15 = vstv %s841_s15  ;;  %s934_s1 = sld [smem:[#allocation3 + $0x47]]  ;;  %s940_s7 = sld [smem:[#allocation3 + $0x41]] }
  0x36   :  { %573 = vmatmul.mubr.msk.f32.vlgmr.msra.gmra.mrb[0].mxu0 %vm155_vm0, %v324_v39  ;;  %v327_v40 = vld [vmem:[#allocation6 + $0x20] sm:$0xff]  ;;  %v198_v16 = vadd.f32 %v197_v2, %v196_v63  ;;  %v201_v17 = vmul.f32 %v200_v3, %v787_v28  ;;  %v204_v18 = vstv %s845_s16  ;;  %v172_v19 = vadd.f32 %v171_v6, %v170_v4  ;;  %s632_s8 = smov [#allocation6]  }
  0x37   :  { %578 = vmatprep.mubr.msk.f32.mxu1 %vm155_vm0, %v327_v40  ;;  %v175_v20 = vmul.f32 %v174_v7, %v787_v28  ;;  %v300_v21 = vmul.f32 %v299_v8, %v774_v10  ;;  %v178_v22 = vstv %s847_s17  ;;  %v301_v23 = vstv %s851_s0  ;;  %s462_s9 = sshll.u32 %s632_s8, 4  ;;  %s463_s9 = int_to_ptr.vmem [resolvable:$true] %s462_s9 }
  0x38   :  { %v304_v24 = vstv %s853_s18  ;;  %v274_v25 = vmul.f32 %v273_v13, %v774_v10  ;;  %v232_v26 = vadd.f32 %v231_v12, %v228_v11  ;;  %v235_v27 = vmul.f32 %v234_v15, %v762_v1  ;;  %s605_s10 = scalar_lea.vmem %s463_s9, 1536  ;;  %p610_p6 = scmp.lt.s32.totalorder %s463_s9, %s463_s9 }
  0x39   :  { %v328_v41 = vld [vmem:[#allocation6 + $0x28] sm:$0xff]  ;;  %v275_v30 = vstv %s857_s19  ;;  %v278_v31 = vstv %s859_s20  ;;  %v238_v32 = vstv %s863_s21  ;;  %v202_v33 = vadd.f32 %v201_v17, %v198_v16  ;;  %p606_p5 = scmp.ne.s32.totalorder %s463_s9, %s605_s10  ;;  %p611_p7 = scmp.lt.s32.totalorder %s605_s10, %s605_s10 }
  0x3a   :  { %579 = vmatmul.mubr.msk.f32.gmra.mrb[2].mxu1 %vm155_vm0, %v328_v41  ;;  %v205_v34 = vmul.f32 %v204_v18, %v758_v61  ;;  %v208_v29 = vstv %s866_s22  ;;  %v176_v36 = vadd.f32 %v175_v20, %v172_v19  ;;  %v179_v10 = vmul.f32 %v178_v22, %v758_v61 }
  0x3b   :  { %v302_v37 = vadd.f32 %v301_v23, %v300_v21  ;;  %v305_v39 = vmul.f32 %v304_v24, %v787_v28  ;;  %v182_v40 = vstv %s877_s23  ;;  %v308_v41 = vstv %s880_s24  ;;  %p612_p8 = por %p611_p7, %p610_p6 }
  0x3c   :  { %v276_v42 = vadd.f32 %v275_v30, %v274_v25  ;;  %v279_v43 = vmul.f32 %v278_v31, %v787_v28  ;;  %v262_v44 = vadd.f32 %v261_v0, %v258_v14  ;;  %v236_v45 = vadd.f32 %v235_v27, %v232_v26 }
  0x3d   :  { %v239_v46 = vmul.f32 %v238_v32, %v792_v35  ;;  %v282_v47 = vstv %s885_s25  ;;  %v242_v48 = vstv %s888_s26  ;;  %v206_v49 = vadd.f32 %v205_v34, %v202_v33  ;;  %p613_p9 = pnand %p612_p8, %p606_p5 }
  0x3e   :  { %v209_v50 = vmul.f32 %v208_v29, %v762_v1  ;;  %v212_v51 = vstv %s891_s27  ;;  %v180_v52 = vadd.f32 %v179_v10, %v176_v36  ;;  %v183_v53 = vmul.f32 %v182_v40, %v762_v1 }
  0x3f   :  { %v306_v54 = vadd.f32 %v305_v39, %v302_v37  ;;  %v309_v28 = vmul.f32 %v308_v41, %v758_v61  ;;  %v186_v55 = vstv %s897_s28  ;;  %v312_v56 = vstv %s901_s29 }
  0x40   :  { %v280_v57 = vadd.f32 %v279_v43, %v276_v42  ;;  %v283_v58 = vmul.f32 %v282_v47, %v758_v61  ;;  %v266_v59 = vadd.f32 %v873_v5, %v262_v44  ;;  %v269_v60 = vmul.f32 %v268_v9, %v797_v38 }
  0x41   :  { %v240_v62 = vadd.f32 %v239_v46, %v236_v45  ;;  %v286_v63 = vstv %s907_s30  ;;  %v243_v0 = vmul.f32 %v242_v48, %v797_v38  ;;  %v210_v2 = vadd.f32 %v209_v50, %v206_v49 }
  0x42   :  { %v213_v3 = vmul.f32 %v212_v51, %v792_v35  ;;  %v216_v4 = vstv %s912_s3  ;;  %v184_v6 = vadd.f32 %v183_v53, %v180_v52  ;;  %v187_v7 = vmul.f32 %v186_v55, %v792_v35 }
  0x43   :  { %v310_v61 = vadd.f32 %v309_v28, %v306_v54  ;;  %v313_v5 = vmul.f32 %v312_v56, %v762_v1  ;;  %v190_v8 = vstv %s917_s4  ;;  %v316_v9 = vstv %s920_s5 }
  0x44   :  { %v284_v11 = vadd.f32 %v283_v58, %v280_v57  ;;  %v287_v12 = vmul.f32 %v286_v63, %v762_v1  ;;  %v290_v13 = vstv %s925_s6  ;;  %v270_v14 = vadd.f32 %v269_v60, %v266_v59 }
  0x45   :  { %v214_v15 = vadd.f32 %v213_v3, %v210_v2  ;;  %v217_v16 = vmul.f32 %v216_v4, %v797_v38  ;;  %v188_v17 = vadd.f32 %v187_v7, %v184_v6  ;;  %v191_v18 = vmul.f32 %v190_v8, %v797_v38 }
  0x46   :  { %v314_v19 = vadd.f32 %v313_v5, %v310_v61  ;;  %v317_v20 = vmul.f32 %v316_v9, %v792_v35  ;;  %v244_v21 = vadd.f32 %v243_v0, %v240_v62  ;;  %v320_v22 = vstv %s934_s1 }
  0x47   :  { %v288_v23 = vadd.f32 %v287_v12, %v284_v11  ;;  %v291_v24 = vmul.f32 %v290_v13, %v792_v35  ;;  %v294_v25 = vstv %s940_s7  ;;  %v218_v27 = vadd.f32 %v217_v16, %v214_v15 }
  0x48   :  { %v192_v31 = vadd.f32 %v191_v18, %v188_v17  ;;  %v318_v32 = vadd.f32 %v317_v20, %v314_v19  ;;  %v321_v33 = vmul.f32 %v320_v22, %v797_v38  ;;  %v295_v36 = vmul.f32 %v294_v25, %v797_v38 }
  0x49   :  { %v292_v29 = vadd.f32 %v291_v24, %v288_v23 }
  0x4a   :  { %v322_v40 = vadd.f32 %v321_v33, %v318_v32 }
  0x4b   :  { %v296_v41 = vadd.f32 %v295_v36, %v292_v29 }
 0x105   :  { %v577_v26 = vpop.f32.mrb[0].mxu1 }
 0x106   :  { %v451_v1 = vadd.f32 %v577_v26, %v270_v14  ;;  %v426_v30 = vpop.f32.mrb[1].mxu1 }
 0x107   :  { %v449_v34 = vadd.f32 %v426_v30, %v244_v21 }
 0x108   :  { %452 = vst.msk [vmem:[#allocation6 + $0x48] sm:$0xff] %vm155_vm0, %v451_v1 }
 0x109   :  { %v574_v10 = vpop.f32.mrb[0].mxu0  ;;  %450 = vst.msk [vmem:[#allocation6 + $0x40] sm:$0xff] %vm155_vm0, %v449_v34 }
 0x10a   :  { %v447_v37 = vadd.f32 %v574_v10, %v218_v27  ;;  %v416_v35 = vpop.f32.mrb[1].mxu0 }
 0x10b   :  { %v445_v39 = vadd.f32 %v416_v35, %v192_v31 }
 0x10c   :  { %448 = vst.msk [vmem:[#allocation6 + $0x38] sm:$0xff] %vm155_vm0, %v447_v37 }
 0x10d   :  { %446 = vst.msk [vmem:[#allocation6 + $0x30] sm:$0xff] %vm155_vm0, %v445_v39  ;;  %v580_v42 = vpop.f32.mrb[2].mxu1 }
 0x10e   :  { %v455_v43 = vadd.f32 %v580_v42, %v322_v40  ;;  %v436_v44 = vpop.f32.mrb[3].mxu1 }
 0x10f   :  { %v453_v38 = vadd.f32 %v436_v44, %v296_v41 }
 0x110   :  { %456 = vst.msk [vmem:[#allocation6 + $0x58] sm:$0xff] %vm155_vm0, %v455_v43 }
 0x111   :  { %454 = vst.msk [vmem:[#allocation6 + $0x50] sm:$0xff] %vm155_vm0, %v453_v38 }
 0x112   :  { %616 = shalt.err (!%p613_p9)
}
 0x113   :  { %s617_s13 = scalar_lea.hbm %s979_s2, 1536 }
 0x114   :  { %p618_p10 = scmp.ne.s32.totalorder %s979_s2, %s617_s13  ;;  %p621_p11 = scmp.lt.u32.totalorder %s617_s13, %s979_s2 }
 0x116   :  { %p623_p12 = pnand %p621_p11, %p618_p10 }
 0x118   :  { %626 = shalt.err (!%p623_p12)
}
 0x119   :  { %s633_s0 = smov 128   ;;  %s634_s18 = smov 8  }
 0x11a   :  { %468 = dma.vmem_to_hbm [thread:$0]  %s463_s9, 1536, %s979_s2, [#allocation4], %s633_s0, %s633_s0, %s634_s18  }
 0x11b   :  { %629 = dma.done.wait [#allocation4], 1536  }
 0x11c   :  { %630 = vsyncadd [#allocation4], 4294965760 }
 0x11d   :  { %472 = vsyncpa [#allocation4], 1 }
 0x11e   :  { %473 = vsyncpa [#allocation5], 1 }

</bundles_post_ra>
